<compile_context>
chip_gen: v7x
topology: tpu7x:2x2x1
jax: 0.10.0
libtpu: 0.0.40
codegen_flags: <defaults>
</compile_context>

<pallas_src>
import functools

import jax
import jax.numpy as jnp
from jax import lax
from jax.experimental import pallas as pl
from jax.experimental.pallas import tpu as pltpu


def _pos_add_layernorm(x, pos, gamma, beta, *, block_batch, seq_len, eps):
    """Broadcast-add the position rows over the BB whole sequences in the
    block, then LayerNorm (single-pass biased variance, eps inside the sqrt)."""
    r, d = x.shape
    # Each block covers `block_batch` whole sequences, so the position rows are
    # just `pos` tiled -- a VPU broadcast add, no gather / matmul needed.
    x = x.reshape(block_batch, seq_len, d) + pos[None, :, :].astype(x.dtype)
    x = x.reshape(r, d)
    mu = jnp.mean(x, axis=-1, keepdims=True)
    ms = jnp.mean(x * x, axis=-1, keepdims=True)
    var = jnp.maximum(ms - mu * mu, 0.0)        # single-pass biased variance
    y = (x - mu) * lax.rsqrt(var + eps)         # rsqrt -> EUP slot (free-ish)
    return y * gamma + beta


def _fused_kernel(ids_ref,      # VMEM (R, 1) int32   flattened input_ids
                  comb_ref,     # VMEM (2, D)         word[:2] + token_type
                  pos_ref,      # VMEM (S, D)         position rows 0..S-1
                  gamma_ref,    # VMEM (1, D) f32
                  beta_ref,     # VMEM (1, D) f32
                  out_ref,      # VMEM (R, D) f32
                  *, block_batch, seq_len, eps):
    # ids are {0, 1} by module contract, so the whole word+token-type gather is
    # ONE vectorised select on the VPU against the fused 2-row table.
    ids = ids_ref[...]                                               # (R, 1)
    rows = jnp.where(ids == 0, comb_ref[0:1, :], comb_ref[1:2, :])   # (R, D)
    y = _pos_add_layernorm(rows.astype(jnp.float32), pos_ref[...],
                           gamma_ref[...], beta_ref[...],
                           block_batch=block_batch, seq_len=seq_len, eps=eps)
    # Dropout: eval-mode identity.
    # TODO(synk): train-mode stochastic dropout (pltpu.prng_*) not implemented.
    out_ref[...] = y.astype(out_ref.dtype)


def _general_kernel(ids_ref, word_ref, tok_ref, pos_ref, gamma_ref, beta_ref,
                    out_ref, *, block_batch, seq_len, eps):
    # Fallback for word ids outside {0, 1} (NOT the reference module's
    # contract -- PyTorch would raise on the 2-row token-type table).
    # Exact (0/1 one-hot, f32 accumulate) but O(R*V); for realistic vocabs use
    # a scalar-prefetch / DMA row gather instead of this MXU one-hot.
    ids = ids_ref[...]                                               # (R, 1)
    r = ids.shape[0]
    v = word_ref.shape[0]
    onehot = (ids == lax.broadcasted_iota(jnp.int32, (r, v), 1)
              ).astype(word_ref.dtype)                               # (R, V)
    word_rows = jnp.dot(onehot, word_ref[...],
                        preferred_element_type=jnp.float32)          # (R, D)
    tok_rows = jnp.where(ids == 0, tok_ref[0:1, :], tok_ref[1:2, :])
    x = word_rows + tok_rows.astype(jnp.float32)
    y = _pos_add_layernorm(x, pos_ref[...], gamma_ref[...], beta_ref[...],
                           block_batch=block_batch, seq_len=seq_len, eps=eps)
    out_ref[...] = y.astype(out_ref.dtype)


def _pick_block_batch(batch, seq_len, target_rows=512):
    """Sequences per grid step: rows (BB*S) sublane-aligned, ~target_rows per
    step for real sizes, and >=2 grid steps when the whole problem would fit a
    single step (so the 2 TensorCores on v7x both get work)."""
    best = 1
    for bb in range(1, batch + 1):
        if batch % bb:
            continue
        if bb * seq_len > max(target_rows, seq_len):
            break
        if bb < batch and (bb * seq_len) % 8 != 0:
            continue  # would violate the (8, 128) block rule
        best = bb
    if best == batch and batch > 1:
        # Whole problem fits one step -> split it so the parallel grid axis has
        # at least two independent blocks (megacore sharding on v7x).
        for bb in range(batch // 2, 0, -1):
            if batch % bb == 0 and (bb * seq_len) % 8 == 0:
                return bb
    return best


def embeddings_forward(input_ids, word_table, pos_table, tok_table,
                       gamma, beta, *, eps=1e-12, fuse_binary_ids=True,
                       target_rows=512):
    B, S = input_ids.shape
    V, D = word_table.shape
    assert pos_table.shape[0] >= S and pos_table.shape[1] == D
    assert tok_table.shape == (2, D)

    BB = _pick_block_batch(B, S, target_rows)
    R = BB * S
    assert B % BB == 0
    # (8,128) rule: rows per block must be sublane-aligned unless the block
    # spans the whole flattened array (tightened per review).
    assert R % 8 == 0 or BB == B, "rows per block must be a multiple of 8"
    grid_steps = B // BB
    grid = (grid_steps,)

    ids_flat = input_ids.reshape(B * S, 1).astype(jnp.int32)
    pos_rows = pos_table[:S]                            # (S, D), native dtype
    gamma2 = gamma.reshape(1, D).astype(jnp.float32)
    beta2 = beta.reshape(1, D).astype(jnp.float32)

    # Grid-invariant inputs: single-buffer them once there is >1 grid step
    # (their index_map is constant, so a second buffer is pure VMEM waste).
    inv_mode = pl.Buffered(1) if grid_steps > 1 else None

    def const_spec(shape):
        return pl.BlockSpec(shape, lambda i: (0, 0), pipeline_mode=inv_mode)

    ids_spec = pl.BlockSpec((R, 1), lambda i: (i, 0))
    out_spec = pl.BlockSpec((R, D), lambda i: (i, 0))

    if fuse_binary_ids:
        # Module contract: token_type_embeddings is indexed with input_ids, so
        # ids must be in {0, 1}; word + token-type collapse to one 2-row table.
        comb = (word_table[:2] + tok_table).astype(jnp.float32)      # (2, D)
        kernel = functools.partial(_fused_kernel, block_batch=BB,
                                   seq_len=S, eps=eps)
        operands = (ids_flat, comb, pos_rows, gamma2, beta2)
        in_specs = [ids_spec, const_spec((2, D)), const_spec((S, D)),
                    const_spec((1, D)), const_spec((1, D))]
    else:
        kernel = functools.partial(_general_kernel, block_batch=BB,
                                   seq_len=S, eps=eps)
        operands = (ids_flat, word_table, tok_table, pos_rows, gamma2, beta2)
        in_specs = [ids_spec, const_spec((V, D)), const_spec((2, D)),
                    const_spec((S, D)), const_spec((1, D)), const_spec((1, D))]

    # Size the scoped VMEM limit from the real footprint (defaults: 16/32 MiB).
    inv_copies = 1 if inv_mode is not None else 2
    table_bytes = sum(int(a.size) * a.dtype.itemsize for a in operands[1:])
    io_bytes = 2 * (R * D * 4 + R * 4)          # double-buffered out + ids
    vmem_need = io_bytes + inv_copies * table_bytes
    vmem_limit = int(min(96 << 20, max(16 << 20, 2 * vmem_need + (4 << 20))))

    out_flat = pl.pallas_call(
        kernel,
        out_shape=jax.ShapeDtypeStruct((B * S, D), jnp.float32),
        grid_spec=pltpu.PrefetchScalarGridSpec(
            num_scalar_prefetch=0,
            grid=grid,
            in_specs=in_specs,
            out_specs=out_spec),
        compiler_params=pltpu.CompilerParams(
            dimension_semantics=("parallel",),   # independent row blocks
            vmem_limit_bytes=vmem_limit),
    )(*operands)

    return out_flat.reshape(B, S, D)


if __name__ == "__main__":
    # Small BERT-like config: hidden=128, vocab=64, max_seq_len=16, B=2, S=8.
    B, S, D = 2, 8, 128
    V, MAX_SEQ = 64, 16
    EPS = 1e-12

    key = jax.random.PRNGKey(0)
    k1, k2, k3, k4 = jax.random.split(key, 4)

    word_table = 0.02 * jax.random.normal(k1, (V, D), jnp.float32)
    pos_table = 0.02 * jax.random.normal(k2, (MAX_SEQ, D), jnp.float32)
    tok_table = 0.02 * jax.random.normal(k3, (2, D), jnp.float32)
    gamma = jnp.ones((D,), jnp.float32)     # nn.LayerNorm default weight
    beta = jnp.zeros((D,), jnp.float32)     # nn.LayerNorm default bias

    # Reference module feeds input_ids into the 2-row token-type table,
    # so valid inputs are restricted to {0, 1}.
    input_ids = jax.random.randint(k4, (B, S), 0, 2, dtype=jnp.int32)

    # Pure-JAX reference.
    pos_ids = jnp.arange(S)
    ref = (word_table[input_ids]
           + pos_table[pos_ids][None, :, :]
           + tok_table[input_ids])
    mu = ref.mean(-1, keepdims=True)
    var = ((ref - mu) ** 2).mean(-1, keepdims=True)
    ref = (ref - mu) / jnp.sqrt(var + EPS) * gamma + beta

    # Default (fused 2-row select) path.
    out = embeddings_forward(input_ids, word_table, pos_table, tok_table,
                             gamma, beta, eps=EPS)
    out = jax.block_until_ready(out)
    assert out.shape == (B, S, D) and out.dtype == jnp.float32
    assert jnp.allclose(out, ref, atol=1e-5), float(jnp.abs(out - ref).max())

    # General-vocab fallback path (one-hot MXU gather) — same ids, same result.
    out_g = embeddings_forward(input_ids, word_table, pos_table, tok_table,
                               gamma, beta, eps=EPS, fuse_binary_ids=False)
    out_g = jax.block_until_ready(out_g)
    assert jnp.allclose(out_g, ref, atol=1e-5), float(jnp.abs(out_g - ref).max())

    print("KERNEL_OK")
</pallas_src>

<mosaic_0001>
module attributes {stable_mosaic.version = 11 : i64} {
  func.func @_fused_kernel(%arg0: i32, %arg1: memref<8x1xi32, #tpu.memory_space<vmem>>, %arg2: memref<2x128xf32, #tpu.memory_space<vmem>>, %arg3: memref<8x128xf32, #tpu.memory_space<vmem>>, %arg4: memref<1x128xf32, #tpu.memory_space<vmem>>, %arg5: memref<1x128xf32, #tpu.memory_space<vmem>>, %arg6: memref<8x128xf32, #tpu.memory_space<vmem>>) attributes {dimension_semantics = [#tpu.dimension_semantics<parallel>], iteration_bounds = array<i64: 2>, scalar_prefetch = 0 : i64, scratch_operands = 0 : i64, tpu.core_type = #tpu.core_type<tc>, window_params = [{transform_indices = @transform_0, window_bounds = array<i64: 8, 1>}, {pipeline_mode = #tpu.pipeline_mode<synchronous>, transform_indices = @transform_1, window_bounds = array<i64: 2, 128>}, {pipeline_mode = #tpu.pipeline_mode<synchronous>, transform_indices = @transform_2, window_bounds = array<i64: 8, 128>}, {pipeline_mode = #tpu.pipeline_mode<synchronous>, transform_indices = @transform_3, window_bounds = array<i64: 1, 128>}, {pipeline_mode = #tpu.pipeline_mode<synchronous>, transform_indices = @transform_4, window_bounds = array<i64: 1, 128>}, {transform_indices = @transform_5, window_bounds = array<i64: 8, 128>}]} {
    %c0 = arith.constant 0 : index
    %c0_0 = arith.constant 0 : index
    %0 = vector.load %arg1[%c0, %c0_0] : memref<8x1xi32, #tpu.memory_space<vmem>>, vector<8x1xi32>
    %c0_i32 = arith.constant 0 : i32
    %1 = vector.broadcast %c0_i32 : i32 to vector<8x1xi32>
    %2 = arith.cmpi eq, %0, %1 : vector<8x1xi32>
    %c0_1 = arith.constant 0 : index
    %c0_2 = arith.constant 0 : index
    %3 = vector.load %arg2[%c0_1, %c0_2] : memref<2x128xf32, #tpu.memory_space<vmem>>, vector<1x128xf32>
    %c1 = arith.constant 1 : index
    %c0_3 = arith.constant 0 : index
    %4 = vector.load %arg2[%c1, %c0_3] : memref<2x128xf32, #tpu.memory_space<vmem>>, vector<1x128xf32>
    %5 = vector.shape_cast %2 : vector<8x1xi1> to vector<8x1xi1>
    %6 = vector.broadcast %5 : vector<8x1xi1> to vector<8x128xi1>
    %7 = vector.shape_cast %3 : vector<1x128xf32> to vector<1x128xf32>
    %8 = vector.broadcast %7 : vector<1x128xf32> to vector<8x128xf32>
    %9 = vector.shape_cast %4 : vector<1x128xf32> to vector<1x128xf32>
    %10 = vector.broadcast %9 : vector<1x128xf32> to vector<8x128xf32>
    %11 = arith.select %6, %8, %10 : vector<8x128xi1>, vector<8x128xf32>
    %c0_4 = arith.constant 0 : index
    %c0_5 = arith.constant 0 : index
    %12 = vector.load %arg3[%c0_4, %c0_5] : memref<8x128xf32, #tpu.memory_space<vmem>>, vector<8x128xf32>
    %c0_6 = arith.constant 0 : index
    %c0_7 = arith.constant 0 : index
    %13 = vector.load %arg4[%c0_6, %c0_7] : memref<1x128xf32, #tpu.memory_space<vmem>>, vector<1x128xf32>
    %c0_8 = arith.constant 0 : index
    %c0_9 = arith.constant 0 : index
    %14 = vector.load %arg5[%c0_8, %c0_9] : memref<1x128xf32, #tpu.memory_space<vmem>>, vector<1x128xf32>
    %15 = vector.shape_cast %11 : vector<8x128xf32> to vector<1x8x128xf32>
    %16 = vector.shape_cast %12 : vector<8x128xf32> to vector<1x8x128xf32>
    %17 = arith.addf %15, %16 : vector<1x8x128xf32>
    %18 = vector.shape_cast %17 : vector<1x8x128xf32> to vector<8x128xf32>
    %cst = arith.constant dense<0.000000e+00> : vector<8xf32>
    %19 = vector.multi_reduction <add>, %18, %cst [1] : vector<8x128xf32> to vector<8xf32>
    %20 = vector.shape_cast %19 : vector<8xf32> to vector<8x1xf32>
    %cst_10 = arith.constant 1.280000e+02 : f32
    %21 = vector.broadcast %cst_10 : f32 to vector<8x1xf32>
    %22 = arith.divf %20, %21 : vector<8x1xf32>
    %23 = arith.mulf %18, %18 : vector<8x128xf32>
    %cst_11 = arith.constant dense<0.000000e+00> : vector<8xf32>
    %24 = vector.multi_reduction <add>, %23, %cst_11 [1] : vector<8x128xf32> to vector<8xf32>
    %25 = vector.shape_cast %24 : vector<8xf32> to vector<8x1xf32>
    %cst_12 = arith.constant 1.280000e+02 : f32
    %26 = vector.broadcast %cst_12 : f32 to vector<8x1xf32>
    %27 = arith.divf %25, %26 : vector<8x1xf32>
    %28 = arith.mulf %22, %22 : vector<8x1xf32>
    %29 = arith.subf %27, %28 : vector<8x1xf32>
    %cst_13 = arith.constant 0.000000e+00 : f32
    %30 = vector.broadcast %cst_13 : f32 to vector<8x1xf32>
    %31 = arith.maximumf %29, %30 : vector<8x1xf32>
    %32 = vector.broadcast %22 : vector<8x1xf32> to vector<8x128xf32>
    %33 = arith.subf %18, %32 : vector<8x128xf32>
    %cst_14 = arith.constant 9.99999996E-13 : f32
    %34 = vector.broadcast %cst_14 : f32 to vector<8x1xf32>
    %35 = arith.addf %31, %34 : vector<8x1xf32>
    %36 = math.rsqrt %35 : vector<8x1xf32>
    %37 = vector.broadcast %36 : vector<8x1xf32> to vector<8x128xf32>
    %38 = arith.mulf %33, %37 : vector<8x128xf32>
    %39 = vector.broadcast %13 : vector<1x128xf32> to vector<8x128xf32>
    %40 = arith.mulf %38, %39 : vector<8x128xf32>
    %41 = vector.broadcast %14 : vector<1x128xf32> to vector<8x128xf32>
    %42 = arith.addf %40, %41 : vector<8x128xf32>
    %c0_15 = arith.constant 0 : index
    %c0_16 = arith.constant 0 : index
    %43 = vector.load %arg6[%c0_15, %c0_16] : memref<8x128xf32, #tpu.memory_space<vmem>>, vector<8x128xf32>
    tpu.vector_store %arg6[%c0_15, %c0_16], %42 {strides = array<i32>} : memref<8x128xf32, #tpu.memory_space<vmem>>, vector<8x128xf32>,
    return
  }
  func.func @transform_0(%arg0: i32) -> (i32, i32) {
    %c0_i32 = arith.constant 0 : i32
    %c0_i32_0 = arith.constant 0 : i32
    return %arg0, %c0_i32 : i32, i32
  }
  func.func @transform_1(%arg0: i32) -> (i32, i32) {
    %c0_i32 = arith.constant 0 : i32
    %c0_i32_0 = arith.constant 0 : i32
    %c0_i32_1 = arith.constant 0 : i32
    return %c0_i32, %c0_i32_0 : i32, i32
  }
  func.func @transform_2(%arg0: i32) -> (i32, i32) {
    %c0_i32 = arith.constant 0 : i32
    %c0_i32_0 = arith.constant 0 : i32
    %c0_i32_1 = arith.constant 0 : i32
    return %c0_i32, %c0_i32_0 : i32, i32
  }
  func.func @transform_3(%arg0: i32) -> (i32, i32) {
    %c0_i32 = arith.constant 0 : i32
    %c0_i32_0 = arith.constant 0 : i32
    %c0_i32_1 = arith.constant 0 : i32
    return %c0_i32, %c0_i32_0 : i32, i32
  }
  func.func @transform_4(%arg0: i32) -> (i32, i32) {
    %c0_i32 = arith.constant 0 : i32
    %c0_i32_0 = arith.constant 0 : i32
    %c0_i32_1 = arith.constant 0 : i32
    return %c0_i32, %c0_i32_0 : i32, i32
  }
  func.func @transform_5(%arg0: i32) -> (i32, i32) {
    %c0_i32 = arith.constant 0 : i32
    %c0_i32_0 = arith.constant 0 : i32
    return %arg0, %c0_i32 : i32, i32
  }
}

</mosaic_0001>

<bundles_post_ra>
// kernel: tpu_custom_call.1
= control target key start
LH: loop header
LB: loop body
LE: loop exit
PB: predicated region body
PF: predicated region fallthrough
CT: control target
= control target key end

     0   :  { %10 = vsyncpa [#allocation3], 0  ;;  %s613_s0 = inlined_call_operand.vmem [shape: s32[16,1], index: 0, kind: input, shape index: {}]   ;;  %s614_s1 = inlined_call_operand.vmem [shape: f32[2,128], index: 1, kind: input, shape index: {}]   ;;  %s615_s2 = inlined_call_operand.vmem [shape: f32[8,128], index: 2, kind: input, shape index: {}]   ;;  %s616_s3 = inlined_call_operand.vmem [shape: f32[1,128], index: 3, kind: input, shape index: {}]   ;;  %s617_s4 = inlined_call_operand.vmem [shape: f32[1,128], index: 4, kind: input, shape index: {}]   ;;  %s618_s5 = inlined_call_operand.hbm [shape: f32[16,128], index: 5, kind: output, shape index: {}]  }
   0x1   :  { %12 = vsyncpa [#allocation3 + $0x1], 0  ;;  %s498_s18 = smov 0   ;;  %s500_s19 = smov 0  }
   0x2   :  { %s502_s20 = smov 0   ;;  %s504_s21 = smov 0  }
   0x3 LB: > { %s519_s22 = sadd.s32 4294967295, %s464_s21   ;;  %s345_s23 = sadd.s32 4294967294, %s464_s21   ;;  %s464_s21 = sphi %s504_s21, %s624_s21   ;;  %s460_s20 = sphi %s502_s20, %s623_s20   ;;  %s456_s19 = sphi %s500_s19, %s622_s19   ;;  %s452_s18 = sphi %s498_s18, %s621_s18  }
   0x4   : > { %s523_s24 = sadd.s32 1, %s464_s21   ;;  %s135_s25 = sadd.s32 1, %s460_s20 }
   0x5   : > { %s132_s26 = ssub.s32 %s464_s21, %s523_s24  ;;  %p145_p0 = scmp.ne.s32.totalorder %s460_s20, %s456_s19 }
   0x6   : > { %p133_p1 = scmp.eq.s32.totalorder %s132_s26, 0  ;;  %p146_p2 = scmp.eq.s32.totalorder %s519_s22, 1 }
   0x7   : > { %p151_p3 = scmp.ne.s32.totalorder %s456_s19, %s452_s18  ;;  %p152_p4 = scmp.eq.s32.totalorder %s345_s23, 1 }
   0x8   : > { %s534_s27 = scalar_select %p133_p1, %s460_s20, %s135_s25  }
   0x9   : > { %p536_p5 = por %p146_p2, %p145_p0  ;;  %p540_p6 = por %p152_p4, %p151_p3 }
   0xa   : > { %p348_p7 = scmp.ge.s32.totalorder %s464_s21, 1  ;;  %p189_p8 = scmp.lt.s32.totalorder %s464_s21, 3 }
   0xc   : > { %p190_p9 = pnand %p348_p7, %p189_p8 }
   0xd   : > { %p216_p10 = scmp.lt.s32.totalorder (!%p190_p9), %s519_s22, 1  ;;  %v466_v0 = vmov (!%p190_p9), 0   ;;  %v351_v3 = vld [vmem:[%s614_s1] ss:$0 sm:$0xff] (!%p190_p9)  ;;  %v352_v4 = vld [vmem:[%s614_s1 + $0x1] ss:$0 sm:$0xff] (!%p190_p9) }
   0xe   : > { %193 = sbr.rel (%p190_p9) target bundleno = 343 (0x157), region = 40  ;;  %399 = vset.pattern.permute.xlu0 (!%p190_p9), %v466_v0  ;;  %v238_v5 = vld [vmem:[%s615_s2] sm:$0xff] (!%p190_p9)  ;;  %s213_s16 = sand.u32 (!%p190_p9), 1, %s456_s19  }
   0xf   : > { %s349_s17 = sshll.u32 (!%p190_p9), %s213_s16, 3  ;;  %v353_v20 = vld [vmem:[%s616_s3] ss:$0 sm:$0xff] (!%p190_p9)  ;;  %s273_s12 = scalar_lea.sflag (!%p190_p9), [#allocation3], %s213_s16 }
  0x10   : > { %v354_v22 = vld [vmem:[%s617_s4] ss:$0 sm:$0xff] (!%p190_p9)  ;;  %s215_s7 = scalar_lea.vmem (!%p190_p9), [#allocation2], %s349_s17 }
  0x11   : > { %s286_s8 = sshll.u32 (!%p190_p9), %s215_s7, 4  ;;  %s573_s8 = int_to_ptr.vmem [resolvable:$true] %s286_s8 }
  0x12   : > { %s402_s13 = scalar_lea.vmem (!%p190_p9), %s573_s8, 128 }
  0x13   : > { %p403_p11 = scmp.ne.s32.totalorder (!%p190_p9), %s573_s8, %s402_s13 }
  0x15   : > { %s217_s30 = scalar_select %p216_p10, %s519_s22, 1 }
  0x16   : > { %p404_p12 = pnand %p403_p11, %p536_p5 }
  0x17   : > { %s350_s6 = sshll.u32 %s217_s30, 3 }
  0x18   : > { %s219_s9 = scalar_lea.vmem %s613_s0, %s350_s6  ;;  %s356_s6 = sshll.u32 %s519_s22, 7 }
  0x19   : > { %v220_v1 = vld [vmem:[%s219_s9] sm:$0xff]  ;;  %s571_s11 = scalar_lea.hbm %s618_s5, %s356_s6  ;;  %p405_p13 = pneg %p404_p12 }
  0x1a   : > { %vm221_vm0 = vcmp.eq.s32.totalorder %v220_v1, 0  ;;  %s467_s22 = smov [#allocation2]  }
  0x1b   : > { %v224_v2 = vsel %vm221_vm0, 1, %v466_v0  ;;  %s406_s14 = sshll.u32 %s467_s22, 4  ;;  %s407_s14 = int_to_ptr.vmem [resolvable:$false] %s406_s14 }
  0x1c   : > { %226 = vperm.xlu0 %399, %v224_v2   ;;  %s408_s15 = scalar_lea.vmem %s407_s14, 256  ;;  %p409_p0 = scmp.lt.s32.totalorder %s573_s8, %s407_s14 }
  0x1d   : > { %p410_p1 = scmp.lt.s32.totalorder %s408_s15, %s402_s13 }
  0x1f   : > { %p411_p2 = por %p410_p1, %p409_p0 }
  0x21   : > { %p412_p3 = pnand %p411_p2, %p405_p13 }
  0x9b   : > { %v227_v6 = vpop.permute.xlu0 %226 }
  0x9c   : > { %vm228_vm1 = vcmp.eq.s32.totalorder %v227_v6, 1 }
  0x9d   : > { %v237_v7 = vsel %vm228_vm1, %v351_v3, %v352_v4 }
  0x9e   : > { %v241_v8 = vadd.f32 %v238_v5, %v237_v7 }
  0xa0   : > { %242 = vadd.xlane.f32.xlu0 %v241_v8  ;;  %v246_v9 = vmul.f32 %v241_v8, %v241_v8 }
  0xa2   : > { %247 = vadd.xlane.f32.xlu1 %v246_v9 }
 0x12d   : > { %v243_v10 = vpop.xlane.xlu0 %242 }
 0x12e   : > { %v245_v11 = vmul.f32 0.0078125, %v243_v10 }
 0x12f   : > { %v248_v12 = vpop.xlane.xlu1 %247 }
 0x130   : > { %v250_v13 = vmul.f32 %v245_v11, %v245_v11  ;;  %v249_v14 = vmul.f32 0.0078125, %v248_v12  ;;  %v253_v18 = vsub.f32 %v241_v8, %v245_v11 }
 0x132   : > { %v251_v15 = vsub.f32 %v249_v14, %v250_v13 }
 0x134   : > { %v252_v16 = vmax.f32 %v251_v15, 0.0 }
 0x136   : > { %v254_v17 = vadd.f32 1e-12, %v252_v16 }
 0x138   : > { %400 = vrsqrt.f32 %v254_v17 }
 0x142   : > { %v401_v19 = vpop.eup %400 }
 0x143   : > { %v256_v21 = vmul.f32 %v401_v19, %v253_v18 }
 0x145   : > { %v263_v23 = vmul.f32 %v353_v20, %v256_v21 }
 0x147   : > { %v270_v24 = vadd.f32 %v354_v22, %v263_v23 }
 0x149   : > { %271 = vst [vmem:[%s215_s7] sm:$0xff] %v270_v24 }
 0x14a   : > { %415 = shalt.err (!%p412_p3)
}
 0x14b   : > { %s416_s16 = scalar_lea.hbm %s571_s11, 128  ;;  %s420_s25 = scalar_lea.hbm %s618_s5, 256 }
 0x14c   : > { %p417_p4 = scmp.ne.s32.totalorder %s571_s11, %s416_s16  ;;  %p421_p9 = scmp.lt.u32.totalorder %s571_s11, %s618_s5 }
 0x14d   : > { %p422_p10 = scmp.lt.u32.totalorder %s420_s25, %s416_s16  ;;  %p424_p12 = scmp.lt.u32.totalorder %s416_s16, %s571_s11 }
 0x14e   : > { %p418_p7 = pnand %p417_p4, %p536_p5 }
 0x14f   : > { %p423_p11 = por %p422_p10, %p421_p9 }
 0x150   : > { %p419_p8 = pneg %p418_p7 }
 0x151   : > { %p425_p13 = por %p424_p12, %p423_p11 }
 0x153   : > { %p426_p0 = pnand %p425_p13, %p419_p8 }
 0x155   : > { %429 = shalt.err (!%p426_p0)
}
 0x156   : > { %359 = dma.vmem_to_hbm [thread:$0]  (%p536_p5), %s573_s8, 128, %s571_s11, %s273_s12  }
 0x157 PF: > { %p365_p1 = scmp.ge.s32.totalorder %s464_s21, 2  ;;  %s298_s6 = sand.u32 1, %s452_s18  }
 0x158   : > { %s299_s7 = scalar_lea.sflag [#allocation3], %s298_s6 }
 0x159   : > { %p362_p2 = pnand %p365_p1, %p540_p6 }
 0x15b   : > { %447 = dma.done.wait (!%p362_p2), %s299_s7, 128  }
 0x15c   : > { %449 = vsyncadd (!%p362_p2), %s299_s7, 4294967168  ;;  %p15_p3 = scmp.ge.s32.totalorder %s523_s24, 4   ;;  %s621_s18 = smov %s456_s19 }
 0x15d   : > { %s622_s19 = smov %s460_s20  ;;  %s623_s20 = smov %s534_s27 }
 0x15e   : > { %s624_s21 = smov %s523_s24  ;;  %17 = sbr.rel (!%p15_p3) target bundleno = 3 (0x3), region = 75 }
 0x165   :  { %304 = vsyncpa [#allocation3], 1 }
 0x166   :  { %306 = vsyncpa [#allocation3 + $0x1], 1 }

</bundles_post_ra>
